<compile_context>
chip_gen: v5e
topology: v5e:2x2
jax: 0.10.0
libtpu: 0.0.40
codegen_flags: <defaults>
</compile_context>

<pallas_src>
import jax
import jax.numpy as jnp
from jax.experimental import pallas as pl
from jax.experimental.pallas import tpu as pltpu

_LANE = 128                       # vreg lane count (last dim)
_SUBLANE_F32 = 8                  # f32 sublane count (second-to-last dim)
_BLOCK_BYTES_TARGET = 4 * 1024 * 1024   # ~4 MiB per block
_COL_TARGET_ELEMS = 2048          # max block width in elements (multiple of 128)
_ROW_CAP = 4096                   # max block height in rows


def _sublane_unit(dtype):
    """Packing-aware sublane unit: 8 for f32, 16 for bf16, 32 for int8."""
    itemsize = jnp.dtype(dtype).itemsize
    return max(_SUBLANE_F32, (_SUBLANE_F32 * 4) // itemsize)


def _block_shape(R, D, dtype):
    """Pick a (tr, td) block: lane-dense columns, rows sized to ~4 MiB/block."""
    itemsize = jnp.dtype(dtype).itemsize
    sub = _sublane_unit(dtype)
    # Column tile: full D if small, else a large multiple of 128.
    if D <= _COL_TARGET_ELEMS:
        td = D
    else:
        td = (_COL_TARGET_ELEMS // _LANE) * _LANE
    # Row tile: fill ~_BLOCK_BYTES_TARGET bytes, multiple of the sublane unit.
    rows = _BLOCK_BYTES_TARGET // max(1, td * itemsize)
    rows = max(sub, (rows // sub) * sub)
    rows = min(rows, _ROW_CAP)
    tr = R if R <= rows else rows
    return tr, td


def _vmem_limit_bytes(block_bytes, extra_bytes=0):
    """2x double-buffered input + 2x output + beta stream + headroom, clamped."""
    need = 4 * block_bytes + 2 * extra_bytes + (2 << 20)
    return int(min(max(need, 16 << 20), 48 << 20))


def _cost(nelem, itemsize):
    return pl.CostEstimate(flops=4 * nelem, transcendentals=nelem,
                           bytes_accessed=2 * nelem * itemsize)


# ------------------------------------------------------------------
# Kernels: elementwise swish with beta broadcast along rows / columns
# ------------------------------------------------------------------
def _swish_col_beta_kernel(beta_ref, x_ref, o_ref):
    # beta tile: (1, TD)  -> broadcasts over rows (2-D path, per-feature beta)
    x = x_ref[...].astype(jnp.float32)
    b = beta_ref[...].astype(jnp.float32)
    o_ref[...] = (x * jax.nn.sigmoid(b * x)).astype(o_ref.dtype)


def _swish_row_beta_kernel(beta_ref, x_ref, o_ref):
    # beta tile: (TR, 1)  -> broadcasts over lanes (4-D path, per-channel beta)
    x = x_ref[...].astype(jnp.float32)
    b = beta_ref[...].astype(jnp.float32)
    o_ref[...] = (x * jax.nn.sigmoid(b * x)).astype(o_ref.dtype)


def _swish_scalar_beta_kernel(beta_ref, x_ref, o_ref):
    # beta: (1, 1) scalar in SMEM -> no VMEM beta stream at all.
    x = x_ref[...].astype(jnp.float32)
    b = beta_ref[0, 0]
    o_ref[...] = (x * jax.nn.sigmoid(b * x)).astype(o_ref.dtype)


# -------------------- 2-D path: x (N, D), per-feature beta (D,) --------------------
def swish_2d(x, beta):
    N, D = x.shape
    itemsize = jnp.dtype(x.dtype).itemsize
    beta_row = beta.reshape(1, D)

    tn, td = _block_shape(N, D, x.dtype)
    grid = (pl.cdiv(N, tn), pl.cdiv(D, td))
    block_bytes = tn * td * itemsize

    return pl.pallas_call(
        _swish_col_beta_kernel,
        out_shape=jax.ShapeDtypeStruct((N, D), x.dtype),
        grid=grid,
        in_specs=[
            # beta row depends only on the column tile -> resident across the row axis.
            pl.BlockSpec((1, td), lambda i, j: (0, j)),
            pl.BlockSpec((tn, td), lambda i, j: (i, j)),
        ],
        out_specs=pl.BlockSpec((tn, td), lambda i, j: (i, j)),
        compiler_params=pltpu.CompilerParams(
            dimension_semantics=("parallel", "parallel"),
            vmem_limit_bytes=_vmem_limit_bytes(block_bytes, td * 4)),
        cost_estimate=_cost(N * D, itemsize),
    )(beta_row, x)


# -------------------- 4-D path: x (N, C, H, W), per-channel beta (C,) --------------------
def swish_4d(x, beta):
    N, C, H, W = x.shape
    itemsize = jnp.dtype(x.dtype).itemsize

    # Lane-dense 2-D view: rows = (n, c) pairs, cols = spatial (H*W).
    R, D = N * C, H * W
    x2 = x.reshape(R, D)
    beta_col = jnp.tile(beta, N).reshape(R, 1)   # per-(n, c)-row beta

    tr, td = _block_shape(R, D, x.dtype)
    grid = (pl.cdiv(R, tr), pl.cdiv(D, td))
    block_bytes = tr * td * itemsize

    out2 = pl.pallas_call(
        _swish_row_beta_kernel,
        out_shape=jax.ShapeDtypeStruct((R, D), x.dtype),
        grid=grid,
        in_specs=[
            # beta column depends only on the (outer) row tile -> only re-DMA'd
            # when i changes, resident across the inner column axis.
            pl.BlockSpec((tr, 1), lambda i, j: (i, 0)),
            pl.BlockSpec((tr, td), lambda i, j: (i, j)),
        ],
        out_specs=pl.BlockSpec((tr, td), lambda i, j: (i, j)),
        compiler_params=pltpu.CompilerParams(
            dimension_semantics=("parallel", "parallel"),
            vmem_limit_bytes=_vmem_limit_bytes(block_bytes, tr * 4)),
        cost_estimate=_cost(R * D, itemsize),
    )(beta_col, x2)
    return out2.reshape(N, C, H, W)


# -------------------- scalar-beta path (dim <= 0): any supported rank --------------------
def swish_scalar(x, beta):
    orig_shape = x.shape
    itemsize = jnp.dtype(x.dtype).itemsize
    total = x.size

    # Prefer a fully lane-dense flatten (cols = k*128) so stores are unmasked
    # even when the original trailing dims are small / odd.
    x2 = None
    for cols in range(_COL_TARGET_ELEMS, 0, -_LANE):
        if total % cols == 0:
            x2 = x.reshape(total // cols, cols)
            break
    if x2 is None:
        # Fallback: generic 2-D view (may use masked partial stores).
        x2 = x.reshape(-1, x.shape[-1])

    R, D = x2.shape
    tr, td = _block_shape(R, D, x.dtype)
    grid = (pl.cdiv(R, tr), pl.cdiv(D, td))
    block_bytes = tr * td * itemsize
    beta_smem = beta.reshape(1, 1)

    out2 = pl.pallas_call(
        _swish_scalar_beta_kernel,
        out_shape=jax.ShapeDtypeStruct((R, D), x.dtype),
        grid=grid,
        in_specs=[
            pl.BlockSpec(memory_space=pltpu.MemorySpace.SMEM),   # (1,1) scalar beta
            pl.BlockSpec((tr, td), lambda i, j: (i, j)),
        ],
        out_specs=pl.BlockSpec((tr, td), lambda i, j: (i, j)),
        compiler_params=pltpu.CompilerParams(
            dimension_semantics=("parallel", "parallel"),
            vmem_limit_bytes=_vmem_limit_bytes(block_bytes)),
        cost_estimate=_cost(total, itemsize),
    )(beta_smem, x2)
    return out2.reshape(orig_shape)


# -------------------- module-like dispatcher --------------------
def swish(x, beta):
    beta_f32 = jnp.asarray(beta, jnp.float32).reshape(-1)   # robust to 0-d / (1,)
    if beta_f32.size == 1:
        return swish_scalar(x, beta_f32)
    if x.ndim == 2:
        return swish_2d(x, beta_f32)
    return swish_4d(x, beta_f32)


if __name__ == "__main__":
    key = jax.random.PRNGKey(0)
    k1, k2, k3, k4 = jax.random.split(key, 4)

    # --- 4-D input (NCHW), Swish(dim=4) -> per-channel beta of ones ---
    x4 = jax.random.normal(k1, (2, 4, 16, 16), dtype=jnp.float32)
    beta4 = jnp.ones((4,), dtype=jnp.float32)
    out4 = swish(x4, beta4)
    jax.block_until_ready(out4)
    ref4 = x4 * jax.nn.sigmoid(beta4[None, :, None, None] * x4)
    assert out4.shape == x4.shape and out4.dtype == x4.dtype
    assert jnp.allclose(out4, ref4, atol=1e-6, rtol=1e-6)

    # --- 2-D input, Swish(dim=32) -> per-feature beta of ones ---
    x2 = jax.random.normal(k2, (2, 32), dtype=jnp.float32)
    beta2 = jnp.ones((32,), dtype=jnp.float32)
    out2 = swish(x2, beta2)
    jax.block_until_ready(out2)
    ref2 = x2 * jax.nn.sigmoid(beta2[None, :] * x2)
    assert out2.shape == x2.shape and out2.dtype == x2.dtype
    assert jnp.allclose(out2, ref2, atol=1e-6, rtol=1e-6)

    # --- larger 2-D case that exercises the tiled grid (incl. a partial edge block) ---
    xl = jax.random.normal(k3, (1040, 640), dtype=jnp.float32)
    betal = jnp.ones((640,), dtype=jnp.float32) * 0.5
    outl = swish(xl, betal)
    jax.block_until_ready(outl)
    refl = xl * jax.nn.sigmoid(betal[None, :] * xl)
    assert jnp.allclose(outl, refl, atol=1e-6, rtol=1e-6)

    # --- bf16 4-D input with scalar beta (dim <= 0 case); f32 compute in-kernel ---
    xb = jax.random.normal(k4, (2, 4, 16, 16), dtype=jnp.bfloat16)
    beta_s = jnp.ones((1,), dtype=jnp.float32)
    outb = swish(xb, beta_s)
    jax.block_until_ready(outb)
    xb32 = xb.astype(jnp.float32)
    refb = (xb32 * jax.nn.sigmoid(1.0 * xb32)).astype(jnp.bfloat16)
    assert outb.shape == xb.shape and outb.dtype == xb.dtype
    assert jnp.allclose(outb.astype(jnp.float32), refb.astype(jnp.float32),
                        atol=1e-2, rtol=1e-2)

    # --- scalar beta, 0-d robustness + f32 2-D shape ---
    xs = jax.random.normal(k3, (8, 256), dtype=jnp.float32)
    outs = swish(xs, jnp.float32(1.0))          # 0-d beta
    jax.block_until_ready(outs)
    refs = xs * jax.nn.sigmoid(xs)
    assert jnp.allclose(outs, refs, atol=1e-6, rtol=1e-6)

    print("KERNEL_OK")
</pallas_src>

<mosaic_0001>
module attributes {stable_mosaic.version = 11 : i64} {
  func.func @_swish_row_beta_kernel(%arg0: i32, %arg1: i32, %arg2: memref<8x1xf32, #tpu.memory_space<vmem>>, %arg3: memref<8x256xf32, #tpu.memory_space<vmem>>, %arg4: memref<8x256xf32, #tpu.memory_space<vmem>>) attributes {dimension_semantics = [#tpu.dimension_semantics<parallel>, #tpu.dimension_semantics<parallel>], iteration_bounds = array<i64: 1, 1>, scalar_prefetch = 0 : i64, scratch_operands = 0 : i64, tpu.core_type = #tpu.core_type<tc>, window_params = [{transform_indices = @transform_0, window_bounds = array<i64: 8, 1>}, {transform_indices = @transform_1, window_bounds = array<i64: 8, 256>}, {transform_indices = @transform_2, window_bounds = array<i64: 8, 256>}]} {
    %c0 = arith.constant 0 : index
    %c0_0 = arith.constant 0 : index
    %0 = vector.load %arg3[%c0, %c0_0] : memref<8x256xf32, #tpu.memory_space<vmem>>, vector<8x256xf32>
    %c0_1 = arith.constant 0 : index
    %c0_2 = arith.constant 0 : index
    %1 = vector.load %arg2[%c0_1, %c0_2] : memref<8x1xf32, #tpu.memory_space<vmem>>, vector<8x1xf32>
    %2 = vector.broadcast %1 : vector<8x1xf32> to vector<8x256xf32>
    %3 = arith.mulf %2, %0 : vector<8x256xf32>
    %4 = arith.negf %3 : vector<8x256xf32>
    %5 = math.exp %4 : vector<8x256xf32>
    %cst = arith.constant 1.000000e+00 : f32
    %6 = vector.broadcast %cst : f32 to vector<8x256xf32>
    %7 = arith.addf %6, %5 : vector<8x256xf32>
    %8 = arith.divf %6, %7 : vector<8x256xf32>
    %9 = arith.mulf %0, %8 : vector<8x256xf32>
    %c0_3 = arith.constant 0 : index
    %c0_4 = arith.constant 0 : index
    %10 = vector.load %arg4[%c0_3, %c0_4] : memref<8x256xf32, #tpu.memory_space<vmem>>, vector<8x256xf32>
    tpu.vector_store %arg4[%c0_3, %c0_4], %9 {strides = array<i32>} : memref<8x256xf32, #tpu.memory_space<vmem>>, vector<8x256xf32>,
    return
  }
  func.func @transform_0(%arg0: i32, %arg1: i32) -> (i32, i32) {
    %c0_i32 = arith.constant 0 : i32
    %c0_i32_0 = arith.constant 0 : i32
    return %arg0, %c0_i32 : i32, i32
  }
  func.func @transform_1(%arg0: i32, %arg1: i32) -> (i32, i32) {
    %c0_i32 = arith.constant 0 : i32
    return %arg0, %arg1 : i32, i32
  }
  func.func @transform_2(%arg0: i32, %arg1: i32) -> (i32, i32) {
    %c0_i32 = arith.constant 0 : i32
    return %arg0, %arg1 : i32, i32
  }
}

</mosaic_0001>

<bundles_post_ra>
// kernel: tpu_custom_call.1
= control target key start
LH: loop header
LB: loop body
LE: loop exit
PB: predicated region body
PF: predicated region fallthrough
CT: control target
= control target key end

     0   :  { %7 = vsyncpa [#allocation3], 0  ;;  %s188_s0 = inlined_call_operand.vmem [shape: f32[8,1], index: 0, kind: input, shape index: {}]   ;;  %s189_s1 = inlined_call_operand.hbm [shape: f32[8,256], index: 1, kind: input, shape index: {}]   ;;  %s190_s2 = inlined_call_operand.hbm [shape: f32[8,256], index: 2, kind: output, shape index: {}]  }
   0x1   :  { %8 = vsyncpa [#allocation4], 0  ;;  %s16_s11 = sshll.u32 %s189_s1, 4  ;;  %s161_s12 = smov [#allocation2]   ;;  %s17_s11 = int_to_ptr.hbm [resolvable:$true] %s16_s11 }
   0x2   :  { %s18_s13 = sshll.u32 %s161_s12, 4  ;;  %s19_s13 = int_to_ptr.vmem [resolvable:$true] %s18_s13 }
   0x3   :  { %21 = dma.hbm_to_vmem [thread:$0]  %s17_s11, 256, %s19_s13, [#allocation3]  }
   0x4   :  { %157 = dma.done.wait [#allocation3], 256  }
   0x5   :  { %158 = vsyncadd [#allocation3], 4294967040  ;;  %v162_v0 = vmov 0   ;;  %v28_v1 = vld [vmem:[%s188_s0] sm:$0xff]  ;;  %v27_v3 = vld [vmem:[#allocation2 + $0x8] sm:$0xff]  ;;  %s163_s0 = smov [#allocation5]  }
   0x6   :  { %100 = vset.pattern.permute.xlu0 %v162_v0  ;;  %v26_v2 = vld [vmem:[#allocation2] sm:$0xff]  ;;  %s83_s1 = sshll.u32 %s163_s0, 4  ;;  %s85_s18 = sshll.u32 %s190_s2, 4  ;;  %s84_s1 = int_to_ptr.vmem [resolvable:$true] %s83_s1  ;;  %s86_s18 = int_to_ptr.hbm [resolvable:$true] %s85_s18 }
   0x7   :  { %31 = vperm.xlu0 %100, %v28_v1  }
  0x79   :  { %v32_v4 = vpop.permute.xlu0 %31 }
  0x7a   :  { %v34_v5 = vmul.f32 %v32_v4, %v26_v2  ;;  %v35_v6 = vmul.f32 %v32_v4, %v27_v3 }
  0x7c   :  { %v95_v7 = vmul.f32 -1.442695, %v34_v5  ;;  %v96_v8 = vmul.f32 -1.442695, %v35_v6 }
  0x7e   :  { %101 = vpow2.f32 %v95_v7 }
  0x7f   :  { %103 = vpow2.f32 %v96_v8 }
  0x84   :  { %v102_v9 = vpop.eup %101 }
  0x85   :  { %v104_v10 = vpop.eup %103  ;;  %v42_v11 = vadd.f32 1.0, %v102_v9 }
  0x86   :  { %v43_v12 = vadd.f32 1.0, %v104_v10 }
  0x87   :  { %105 = vrcp.f32 %v42_v11  ;;  %v55_v18 = vand.u32 2147483648, %v42_v11  ;;  %v53_v21 = vand.u32 2147483647, %v42_v11  ;;  %vm49_vm2 = vweird.f32 %v42_v11 }
  0x88   :  { %107 = vrcp.f32 %v43_v12  ;;  %v70_v22 = vand.u32 2147483648, %v43_v12  ;;  %v68_v24 = vand.u32 2147483647, %v43_v12  ;;  %vm64_vm4 = vweird.f32 %v43_v12 }
  0x89   :  { %v56_v26 = vor.u32 1.1754944e-38, %v55_v18  ;;  %vm54_vm5 = vcmp.eq.f32.partialorder %v53_v21, 8.507059e+37 }
  0x8a   :  { %v71_v29 = vor.u32 1.1754944e-38, %v70_v22  ;;  %vm69_vm7 = vcmp.eq.f32.partialorder %v68_v24, 8.507059e+37 }
  0x8d   :  { %v106_v13 = vpop.eup %105 }
  0x8e   :  { %v108_v14 = vpop.eup %107  ;;  %v45_v15 = vmul.f32 %v106_v13, %v42_v11  ;;  %vm50_vm0 = vweird.f32 %v106_v13 }
  0x8f   :  { %v60_v16 = vmul.f32 %v108_v14, %v43_v12  ;;  %vm65_vm1 = vweird.f32 %v108_v14  ;;  %vm51_vm3 = vmor %vm49_vm2, %vm50_vm0 }
  0x90   :  { %v46_v17 = vsub.f32 1.0, %v45_v15  ;;  %vm66_vm6 = vmor %vm64_vm4, %vm65_vm1 }
  0x91   :  { %v61_v19 = vsub.f32 1.0, %v60_v16 }
  0x92   :  { %v47_v20 = vmul.f32 %v106_v13, %v46_v17 }
  0x93   :  { %v62_v23 = vmul.f32 %v108_v14, %v61_v19 }
  0x94   :  { %v48_v25 = vadd.f32 %v106_v13, %v47_v20 }
  0x95   :  { %v63_v27 = vadd.f32 %v108_v14, %v62_v23 }
  0x96   :  { %v52_v28 = vsel %vm51_vm3, %v106_v13, %v48_v25 }
  0x97   :  { %v57_v30 = vsel %vm54_vm5, %v56_v26, %v52_v28  ;;  %v67_v31 = vsel %vm66_vm6, %v108_v14, %v63_v27 }
  0x98   :  { %v72_v32 = vsel %vm69_vm7, %v71_v29, %v67_v31  ;;  %v74_v33 = vmul.f32 %v57_v30, %v26_v2 }
  0x99   :  { %v75_v34 = vmul.f32 %v72_v32, %v27_v3 }
  0x9a   :  { %76 = vst [vmem:[#allocation5] sm:$0xff] %v74_v33 }
  0x9b   :  { %77 = vst [vmem:[#allocation5 + $0x8] sm:$0xff] %v75_v34 }
  0x9c   :  { %88 = dma.vmem_to_hbm [thread:$0]  %s84_s1, 256, %s86_s18, [#allocation4]  }
  0x9d   :  { %159 = dma.done.wait [#allocation4], 256  }
  0x9e   :  { %160 = vsyncadd [#allocation4], 4294967040 }
  0x9f   :  { %93 = vsyncpa [#allocation3], 1 }
  0xa0   :  { %94 = vsyncpa [#allocation4], 1 }

</bundles_post_ra>
